<compile_context>
chip_gen: v5e
topology: v5e:2x2
jax: 0.10.0
libtpu: 0.0.40
codegen_flags: <defaults>
</compile_context>

<pallas_src>
import jax
import jax.numpy as jnp
from jax.experimental import pallas as pl
from jax.experimental.pallas import tpu as pltpu


def _round_up(x, m):
    return ((x + m - 1) // m) * m


def inv_dynamics_kernel(x_ref, wenc_ref, enc_bias_ref, w1_ref, w2_ref, binv_ref,
                        out_ref, acc_ref):
    # x_ref:        (2, tm, tk) bf16 -- frame0 / frame1 rows of the current batch tile
    # wenc_ref:     (tk, E)     bf16 -- normalization-folded encoder weight K-slab
    # enc_bias_ref: (1, E)      f32  -- -(mean/std) @ w_enc (folded normalization bias)
    # w1_ref/w2_ref:(E, A)      bf16 -- inv_model weight halves (frame0 / frame1)
    # binv_ref:     (1, A)      f32  -- inv_model bias
    # out_ref:      (tm, A)     f32  -- partial output for this K-split
    # acc_ref:      (2*tm, E)   f32  -- embedding accumulator, lives across the K axis
    s = pl.program_id(1)                 # K-split index (v7x: one split per core)
    k = pl.program_id(2)                 # K-streaming step within this split
    nk = pl.num_programs(2)

    @pl.when(k == 0)
    def _init():
        # Folded-normalization bias only contributes to split 0 (partials are summed
        # outside the kernel).
        gate = jnp.where(s == 0, 1.0, 0.0).astype(jnp.float32)
        acc_ref[...] = jnp.broadcast_to(enc_bias_ref[...] * gate, acc_ref.shape)

    x = x_ref[...]
    # Fuse both frames into a single MXU matmul: (2*tm, tk) @ (tk, E).
    # Free layout merge only because tm is a multiple of 16 (bf16 sublane pack).
    xx = x.reshape(x.shape[0] * x.shape[1], x.shape[2])
    acc_ref[...] += jnp.dot(xx, wenc_ref[...], preferred_element_type=jnp.float32)

    @pl.when(k == nk - 1)
    def _finalize():
        tm = out_ref.shape[0]
        emb = acc_ref[...]
        e0 = emb[:tm, :].astype(jnp.bfloat16)    # frame-0 embeddings of this batch tile
        e1 = emb[tm:, :].astype(jnp.bfloat16)    # frame-1 embeddings
        gate = jnp.where(s == 0, 1.0, 0.0).astype(jnp.float32)
        out_ref[...] = (
            jnp.dot(e0, w1_ref[...], preferred_element_type=jnp.float32)
            + jnp.dot(e1, w2_ref[...], preferred_element_type=jnp.float32)
            + binv_ref[...] * gate                # inv_model bias only once (split 0)
        ).astype(out_ref.dtype)


def prepare_inv_dynamics_params(mean, std, w_enc, w_inv, b_inv, c, h, w,
                                *, tk=2048, k_split=1):
    """One-time weight folding / padding / casting (hoisted out of the forward path)."""
    d, e = w_enc.shape
    a = w_inv.shape[1]
    assert w_inv.shape[0] == 2 * e
    assert d == c * h * w

    tk_eff = min(tk, _round_up(d, 256))            # don't over-tile tiny reductions
    dp = _round_up(d, tk_eff * k_split)            # padded reduction dim
    ep = _round_up(e, 128)                         # lane-dense embedding dim
    ap = _round_up(a, 128)                         # lane-dense action dim

    # Fold per-channel normalization into the (constant) encoder weights.
    mean_flat = jnp.broadcast_to(mean.reshape(c, 1, 1), (c, h, w)).reshape(d)
    inv_std_flat = (1.0 / jnp.broadcast_to(std.reshape(c, 1, 1), (c, h, w))).reshape(d)
    w_enc_f32 = w_enc.astype(jnp.float32)
    w_enc_scaled = w_enc_f32 * inv_std_flat[:, None]                     # (d, e)
    enc_bias = -(mean_flat * inv_std_flat) @ w_enc_f32                   # (e,)

    w_enc_p = jnp.pad(w_enc_scaled, ((0, dp - d), (0, ep - e))).astype(jnp.bfloat16)
    enc_bias_p = jnp.pad(enc_bias, (0, ep - e)).reshape(1, ep).astype(jnp.float32)

    # inv_model: split the weight into the two embedding halves; keep bf16 (fast MXU).
    w1 = jnp.pad(w_inv[:e, :].astype(jnp.float32),
                 ((0, ep - e), (0, ap - a))).astype(jnp.bfloat16)
    w2 = jnp.pad(w_inv[e:, :].astype(jnp.float32),
                 ((0, ep - e), (0, ap - a))).astype(jnp.bfloat16)
    binv = jnp.pad(b_inv.astype(jnp.float32), (0, ap - a)).reshape(1, ap)

    return dict(w_enc=w_enc_p, enc_bias=enc_bias_p, w1=w1, w2=w2, b_inv=binv,
                d=d, e=e, a=a, dp=dp, ep=ep, ap=ap, tk=tk_eff, k_split=k_split)


def inv_dynamics_forward(obs, params, *, tm_max=512, wenc_buffers=2,
                         vmem_limit_bytes=48 * 1024 * 1024):
    """obs: [b, n=2, c, h, w] float. Returns [b, action_dim] float32."""
    b, n, c, h, w = obs.shape
    assert n == 2, "InvDynamics concatenates exactly 2 frame embeddings"
    d, a = params["d"], params["a"]
    dp, ep, ap = params["dp"], params["ep"], params["ap"]
    tk, k_split = params["tk"], params["k_split"]
    assert d == c * h * w

    # Batch tile: multiple of 16 (bf16 sublane pack, keeps the in-kernel merge free),
    # capped at tm_max so a big batch still shares one w_enc stream per tile.
    tm = min(tm_max, _round_up(b, 16))
    bp = _round_up(b, tm)

    # bf16 FIRST, then frame-major stack + pad (halves this pre-kernel HBM traffic).
    x = obs.astype(jnp.bfloat16).reshape(b, 2, d).transpose(1, 0, 2)    # (2, b, d)
    x = jnp.pad(x, ((0, 0), (0, bp - b), (0, dp - d)))                  # (2, bp, dp)

    ksteps = dp // (tk * k_split)
    grid = (bp // tm, k_split, ksteps)   # (batch tiles, K-split [parallel], K steps)

    wenc_index_map = lambda m, s, k: (s * ksteps + k, 0)
    if wenc_buffers > 2:
        # Only if xprof shows exposed w_enc DMA and the VMEM budget allows.
        wenc_spec = pl.BlockSpec((tk, ep), wenc_index_map,
                                 pipeline_mode=pl.Buffered(wenc_buffers))
    else:
        wenc_spec = pl.BlockSpec((tk, ep), wenc_index_map)

    out_p = pl.pallas_call(
        inv_dynamics_kernel,
        out_shape=jax.ShapeDtypeStruct((k_split, bp, ap), jnp.float32),
        grid_spec=pltpu.PrefetchScalarGridSpec(
            num_scalar_prefetch=0,
            grid=grid,
            in_specs=[
                pl.BlockSpec((2, tm, tk),
                             lambda m, s, k: (0, m, s * ksteps + k)),   # obs (2 frames)
                wenc_spec,                                              # streamed w_enc
                pl.BlockSpec((1, ep), lambda m, s, k: (0, 0)),          # folded-norm bias
                pl.BlockSpec((ep, ap), lambda m, s, k: (0, 0)),         # inv_model W[:E]
                pl.BlockSpec((ep, ap), lambda m, s, k: (0, 0)),         # inv_model W[E:]
                pl.BlockSpec((1, ap), lambda m, s, k: (0, 0)),          # inv_model bias
            ],
            out_specs=pl.BlockSpec((None, tm, ap), lambda m, s, k: (s, m, 0)),
            scratch_shapes=[pltpu.VMEM((2 * tm, ep), jnp.float32)],
        ),
        compiler_params=pltpu.CompilerParams(
            dimension_semantics=("parallel", "parallel", "arbitrary"),
            # above the default scoped limit on every gen, below physical VMEM on v7x
            vmem_limit_bytes=vmem_limit_bytes,
        ),
    )(x, params["w_enc"], params["enc_bias"], params["w1"], params["w2"],
      params["b_inv"])

    # Sum the K-split partials (tiny [k_split, bp, ap] reduce), drop padding.
    return out_p.sum(axis=0)[:b, :a]


def reference_forward(obs, mean, std, w_enc, w_inv, b_inv):
    b, n, c, h, w = obs.shape
    x = obs.reshape(b * n, c, h, w).astype(jnp.float32)
    x = (x - mean.reshape(1, c, 1, 1)) / std.reshape(1, c, 1, 1)
    x = x.reshape(b * n, c * h * w)
    embed = x @ w_enc
    reshaped = embed.reshape(b, -1)
    return reshaped @ w_inv + b_inv


if __name__ == "__main__":
    key = jax.random.PRNGKey(0)
    b, n, c, h, w = 2, 2, 3, 16, 16          # two stacked frames per sample
    embd_size = 32                            # synthetic stand-in for VC-1's 768
    action_dim = 4
    d = c * h * w

    k_obs, k_enc, k_w, k_b = jax.random.split(key, 4)
    obs = jax.random.uniform(k_obs, (b, n, c, h, w), dtype=jnp.float32)

    # model_transforms: ImageNet normalization constants (resize omitted, see TODO above)
    mean = jnp.array([0.485, 0.456, 0.406], dtype=jnp.float32)
    std = jnp.array([0.229, 0.224, 0.225], dtype=jnp.float32)

    # deterministic synthetic parameters
    w_enc = jax.random.normal(k_enc, (d, embd_size), dtype=jnp.float32) * 0.02
    w_inv = jax.random.normal(k_w, (2 * embd_size, action_dim), dtype=jnp.float32) * 0.05
    b_inv = jax.random.normal(k_b, (action_dim,), dtype=jnp.float32) * 0.01

    ref = reference_forward(obs, mean, std, w_enc, w_inv, b_inv)

    # (a) default config: big K tile, single K split (v5e / v6e style).
    params1 = prepare_inv_dynamics_params(mean, std, w_enc, w_inv, b_inv, c, h, w)
    out1 = jax.block_until_ready(inv_dynamics_forward(obs, params1))
    assert out1.shape == (b, action_dim)
    assert jnp.allclose(out1, ref, atol=3e-2, rtol=3e-2), (out1, ref)

    # (b) K split across two "cores" (v7x-style second-TensorCore path), smaller tk so
    #     real data genuinely straddles both splits and the partial-sum logic is tested.
    params2 = prepare_inv_dynamics_params(mean, std, w_enc, w_inv, b_inv, c, h, w,
                                          tk=256, k_split=2)
    out2 = jax.block_until_ready(inv_dynamics_forward(obs, params2))
    assert out2.shape == (b, action_dim)
    assert jnp.allclose(out2, ref, atol=3e-2, rtol=3e-2), (out2, ref)

    print("KERNEL_OK")
</pallas_src>

<mosaic_0001>
module attributes {stable_mosaic.version = 11 : i64} {
  func.func @inv_dynamics_kernel(%arg0: i32, %arg1: i32, %arg2: i32, %arg3: memref<2x16x768xbf16, #tpu.memory_space<vmem>>, %arg4: memref<768x128xbf16, #tpu.memory_space<vmem>>, %arg5: memref<1x128xf32, #tpu.memory_space<vmem>>, %arg6: memref<128x128xbf16, #tpu.memory_space<vmem>>, %arg7: memref<128x128xbf16, #tpu.memory_space<vmem>>, %arg8: memref<1x128xf32, #tpu.memory_space<vmem>>, %arg9: memref<1x16x128xf32, #tpu.memory_space<vmem>>, %arg10: memref<32x128xf32, #tpu.memory_space<vmem>>) attributes {dimension_semantics = [#tpu.dimension_semantics<parallel>, #tpu.dimension_semantics<parallel>, #tpu.dimension_semantics<arbitrary>], iteration_bounds = array<i64: 1, 1, 1>, scalar_prefetch = 0 : i64, scratch_operands = 1 : i64, tpu.core_type = #tpu.core_type<tc>, window_params = [{transform_indices = @transform_0, window_bounds = array<i64: 2, 16, 768>}, {transform_indices = @transform_1, window_bounds = array<i64: 768, 128>}, {pipeline_mode = #tpu.pipeline_mode<synchronous>, transform_indices = @transform_2, window_bounds = array<i64: 1, 128>}, {pipeline_mode = #tpu.pipeline_mode<synchronous>, transform_indices = @transform_3, window_bounds = array<i64: 128, 128>}, {pipeline_mode = #tpu.pipeline_mode<synchronous>, transform_indices = @transform_4, window_bounds = array<i64: 128, 128>}, {pipeline_mode = #tpu.pipeline_mode<synchronous>, transform_indices = @transform_5, window_bounds = array<i64: 1, 128>}, {transform_indices = @transform_6, window_bounds = array<i64: 1, 16, 128>}]} {
    %c0_i32 = arith.constant 0 : i32
    %0 = arith.cmpi eq, %arg2, %c0_i32 : i32
    %1 = arith.extui %0 : i1 to i32
    %c0_i32_0 = arith.constant 0 : i32
    %2 = arith.cmpi ne, %1, %c0_i32_0 : i32
    scf.if %2 {
      %c0_i32_11 = arith.constant 0 : i32
      %13 = arith.cmpi eq, %arg1, %c0_i32_11 : i32
      %cst_12 = arith.constant 1.000000e+00 : f32
      %cst_13 = arith.constant 0.000000e+00 : f32
      %14 = arith.select %13, %cst_12, %cst_13 : f32
      %c0_14 = arith.constant 0 : index
      %c0_15 = arith.constant 0 : index
      %15 = vector.load %arg5[%c0_14, %c0_15] : memref<1x128xf32, #tpu.memory_space<vmem>>, vector<1x128xf32>
      %16 = vector.broadcast %14 : f32 to vector<1x128xf32>
      %17 = arith.mulf %15, %16 : vector<1x128xf32>
      %18 = vector.shape_cast %17 : vector<1x128xf32> to vector<1x128xf32>
      %19 = vector.broadcast %18 : vector<1x128xf32> to vector<32x128xf32>
      %c0_16 = arith.constant 0 : index
      %c0_17 = arith.constant 0 : index
      %20 = vector.load %arg10[%c0_16, %c0_17] : memref<32x128xf32, #tpu.memory_space<vmem>>, vector<32x128xf32>
      tpu.vector_store %arg10[%c0_16, %c0_17], %19 {strides = array<i32>} : memref<32x128xf32, #tpu.memory_space<vmem>>, vector<32x128xf32>,
    } else {
    }
    %c0 = arith.constant 0 : index
    %c0_1 = arith.constant 0 : index
    %c0_2 = arith.constant 0 : index
    %3 = vector.load %arg3[%c0, %c0_1, %c0_2] : memref<2x16x768xbf16, #tpu.memory_space<vmem>>, vector<2x16x768xbf16>
    %4 = vector.shape_cast %3 : vector<2x16x768xbf16> to vector<32x768xbf16>
    %c0_3 = arith.constant 0 : index
    %c0_4 = arith.constant 0 : index
    %5 = vector.load %arg10[%c0_3, %c0_4] : memref<32x128xf32, #tpu.memory_space<vmem>>, vector<32x128xf32>
    %c0_5 = arith.constant 0 : index
    %c0_6 = arith.constant 0 : index
    %6 = vector.load %arg4[%c0_5, %c0_6] : memref<768x128xbf16, #tpu.memory_space<vmem>>, vector<768x128xbf16>
    %cst = arith.constant dense<0.000000e+00> : vector<32x128xf32>
    %7 = tpu.matmul %4, %6, %cst {dimension_numbers = #tpu.dot_dimension_numbers<[1], [0], [0], [1], [0, 0, 1, 1], [], []>} : vector<32x768xbf16>, vector<768x128xbf16>, vector<32x128xf32> -> vector<32x128xf32>
    %8 = arith.addf %5, %7 : vector<32x128xf32>
    %c0_7 = arith.constant 0 : index
    %c0_8 = arith.constant 0 : index
    %9 = vector.load %arg10[%c0_7, %c0_8] : memref<32x128xf32, #tpu.memory_space<vmem>>, vector<32x128xf32>
    tpu.vector_store %arg10[%c0_7, %c0_8], %8 {strides = array<i32>} : memref<32x128xf32, #tpu.memory_space<vmem>>, vector<32x128xf32>,
    %c0_i32_9 = arith.constant 0 : i32
    %10 = arith.cmpi eq, %arg2, %c0_i32_9 : i32
    %11 = arith.extui %10 : i1 to i32
    %c0_i32_10 = arith.constant 0 : i32
    %12 = arith.cmpi ne, %11, %c0_i32_10 : i32
    scf.if %12 {
      %c0_11 = arith.constant 0 : index
      %c0_12 = arith.constant 0 : index
      %13 = vector.load %arg10[%c0_11, %c0_12] : memref<32x128xf32, #tpu.memory_space<vmem>>, vector<32x128xf32>
      %14 = vector.extract_strided_slice %13 {offsets = [0, 0], sizes = [16, 128], strides = [1, 1]} : vector<32x128xf32> to vector<16x128xf32>
      %15 = arith.truncf %14 : vector<16x128xf32> to vector<16x128xbf16>
      %16 = vector.extract_strided_slice %13 {offsets = [16, 0], sizes = [16, 128], strides = [1, 1]} : vector<32x128xf32> to vector<16x128xf32>
      %17 = arith.truncf %16 : vector<16x128xf32> to vector<16x128xbf16>
      %c0_i32_13 = arith.constant 0 : i32
      %18 = arith.cmpi eq, %arg1, %c0_i32_13 : i32
      %cst_14 = arith.constant 1.000000e+00 : f32
      %cst_15 = arith.constant 0.000000e+00 : f32
      %19 = arith.select %18, %cst_14, %cst_15 : f32
      %c0_16 = arith.constant 0 : index
      %c0_17 = arith.constant 0 : index
      %20 = vector.load %arg6[%c0_16, %c0_17] : memref<128x128xbf16, #tpu.memory_space<vmem>>, vector<128x128xbf16>
      %cst_18 = arith.constant dense<0.000000e+00> : vector<16x128xf32>
      %21 = tpu.matmul %15, %20, %cst_18 {dimension_numbers = #tpu.dot_dimension_numbers<[1], [0], [0], [1], [0, 0, 1, 1], [], []>} : vector<16x128xbf16>, vector<128x128xbf16>, vector<16x128xf32> -> vector<16x128xf32>
      %c0_19 = arith.constant 0 : index
      %c0_20 = arith.constant 0 : index
      %22 = vector.load %arg7[%c0_19, %c0_20] : memref<128x128xbf16, #tpu.memory_space<vmem>>, vector<128x128xbf16>
      %cst_21 = arith.constant dense<0.000000e+00> : vector<16x128xf32>
      %23 = tpu.matmul %17, %22, %cst_21 {dimension_numbers = #tpu.dot_dimension_numbers<[1], [0], [0], [1], [0, 0, 1, 1], [], []>} : vector<16x128xbf16>, vector<128x128xbf16>, vector<16x128xf32> -> vector<16x128xf32>
      %24 = arith.addf %21, %23 : vector<16x128xf32>
      %c0_22 = arith.constant 0 : index
      %c0_23 = arith.constant 0 : index
      %25 = vector.load %arg8[%c0_22, %c0_23] : memref<1x128xf32, #tpu.memory_space<vmem>>, vector<1x128xf32>
      %26 = vector.broadcast %19 : f32 to vector<1x128xf32>
      %27 = arith.mulf %25, %26 : vector<1x128xf32>
      %28 = vector.broadcast %27 : vector<1x128xf32> to vector<16x128xf32>
      %29 = arith.addf %24, %28 : vector<16x128xf32>
      %c0_24 = arith.constant 0 : index
      %c0_25 = arith.constant 0 : index
      %c0_26 = arith.constant 0 : index
      %30 = vector.load %arg9[%c0_24, %c0_25, %c0_26] : memref<1x16x128xf32, #tpu.memory_space<vmem>>, vector<1x16x128xf32>
      %31 = vector.shape_cast %30 : vector<1x16x128xf32> to vector<16x128xf32>
      %32 = vector.shape_cast %29 : vector<16x128xf32> to vector<1x16x128xf32>
      tpu.vector_store %arg9[%c0_24, %c0_25, %c0_26], %32 {strides = array<i32>} : memref<1x16x128xf32, #tpu.memory_space<vmem>>, vector<1x16x128xf32>,
    } else {
    }
    return
  }
  func.func @transform_0(%arg0: i32, %arg1: i32, %arg2: i32) -> (i32, i32, i32) {
    %c1_i32 = arith.constant 1 : i32
    %0 = arith.muli %arg1, %c1_i32 : i32
    %1 = arith.addi %0, %arg2 : i32
    %c0_i32 = arith.constant 0 : i32
    %c0_i32_0 = arith.constant 0 : i32
    return %c0_i32, %arg0, %1 : i32, i32, i32
  }
  func.func @transform_1(%arg0: i32, %arg1: i32, %arg2: i32) -> (i32, i32) {
    %c1_i32 = arith.constant 1 : i32
    %0 = arith.muli %arg1, %c1_i32 : i32
    %1 = arith.addi %0, %arg2 : i32
    %c0_i32 = arith.constant 0 : i32
    %c0_i32_0 = arith.constant 0 : i32
    return %1, %c0_i32 : i32, i32
  }
  func.func @transform_2(%arg0: i32, %arg1: i32, %arg2: i32) -> (i32, i32) {
    %c0_i32 = arith.constant 0 : i32
    %c0_i32_0 = arith.constant 0 : i32
    %c0_i32_1 = arith.constant 0 : i32
    return %c0_i32, %c0_i32_0 : i32, i32
  }
  func.func @transform_3(%arg0: i32, %arg1: i32, %arg2: i32) -> (i32, i32) {
    %c0_i32 = arith.constant 0 : i32
    %c0_i32_0 = arith.constant 0 : i32
    %c0_i32_1 = arith.constant 0 : i32
    return %c0_i32, %c0_i32_0 : i32, i32
  }
  func.func @transform_4(%arg0: i32, %arg1: i32, %arg2: i32) -> (i32, i32) {
    %c0_i32 = arith.constant 0 : i32
    %c0_i32_0 = arith.constant 0 : i32
    %c0_i32_1 = arith.constant 0 : i32
    return %c0_i32, %c0_i32_0 : i32, i32
  }
  func.func @transform_5(%arg0: i32, %arg1: i32, %arg2: i32) -> (i32, i32) {
    %c0_i32 = arith.constant 0 : i32
    %c0_i32_0 = arith.constant 0 : i32
    %c0_i32_1 = arith.constant 0 : i32
    return %c0_i32, %c0_i32_0 : i32, i32
  }
  func.func @transform_6(%arg0: i32, %arg1: i32, %arg2: i32) -> (i32, i32, i32) {
    %c0_i32 = arith.constant 0 : i32
    %c0_i32_0 = arith.constant 0 : i32
    return %arg1, %arg0, %c0_i32 : i32, i32, i32
  }
}

</mosaic_0001>

<bundles_post_ra>
// kernel: tpu_custom_call.1
= control target key start
LH: loop header
LB: loop body
LE: loop exit
PB: predicated region body
PF: predicated region fallthrough
CT: control target
= control target key end

     0   :  { %11 = vsyncpa [#allocation4], 0  ;;  %s1483_s0 = inlined_call_operand.hbm [shape: bf16[2,16,768], index: 0, kind: input, shape index: {}]   ;;  %s1484_s1 = inlined_call_operand.hbm [shape: bf16[768,128], index: 1, kind: input, shape index: {}]   ;;  %s1485_s2 = inlined_call_operand.vmem [shape: f32[1,128], index: 2, kind: input, shape index: {}]   ;;  %s1486_s3 = inlined_call_operand.hbm [shape: bf16[128,128], index: 3, kind: input, shape index: {}]   ;;  %s1487_s4 = inlined_call_operand.hbm [shape: bf16[128,128], index: 4, kind: input, shape index: {}]   ;;  %s1488_s5 = inlined_call_operand.vmem [shape: f32[1,128], index: 5, kind: input, shape index: {}]   ;;  %s1489_s6 = inlined_call_operand.hbm [shape: f32[1,16,128], index: 6, kind: output, shape index: {}]  }
   0x1   :  { %12 = vsyncpa [#allocation7], 0 }
   0x2   :  { %13 = vsyncpa [#allocation10], 0  ;;  %s40_s23 = sshll.u32 %s1484_s1, 4  ;;  %s41_s23 = int_to_ptr.hbm [resolvable:$true] %s40_s23 }
   0x3   :  { %14 = vsyncpa [#allocation5], 0  ;;  %s1416_s24 = smov [#allocation6]   ;;  %s23_s28 = sshll.u32 %s1483_s0, 4  ;;  %s24_s28 = int_to_ptr.hbm [resolvable:$true] %s23_s28 }
   0x4   :  { %s42_s25 = sshll.u32 %s1416_s24, 4  ;;  %s1417_s29 = smov 64   ;;  %s43_s25 = int_to_ptr.vmem [resolvable:$true] %s42_s25 }
   0x5   :  { %s1418_s30 = smov 4   ;;  %s1419_s7 = smov [#allocation3]  }
   0x6   :  { %48 = dma.hbm_to_vmem [thread:$0]  %s41_s23, 6144, %s43_s25, [#allocation7], %s1417_s29, %s1417_s29, %s1418_s30  }
   0x7   :  { %s25_s8 = sshll.u32 %s1419_s7, 4  ;;  %s1420_s9 = smov 384   ;;  %s26_s8 = int_to_ptr.vmem [resolvable:$true] %s25_s8 }
   0x8   :  { %s1421_s10 = smov 24   ;;  %s55_s12 = sshll.u32 %s1486_s3, 4  ;;  %s56_s12 = int_to_ptr.hbm [resolvable:$true] %s55_s12 }
   0x9   :  { %31 = dma.hbm_to_vmem [thread:$0]  %s24_s28, 1536, %s26_s8, [#allocation4], %s1420_s9, %s1420_s9, %s1421_s10  }
   0xa   :  { %s1422_s13 = smov [#allocation8]   ;;  %s68_s16 = sshll.u32 %s1487_s4, 4  ;;  %s69_s16 = int_to_ptr.hbm [resolvable:$true] %s68_s16 }
   0xb   :  { %s57_s14 = sshll.u32 %s1422_s13, 4  ;;  %s1423_s17 = smov [#allocation9]   ;;  %s58_s14 = int_to_ptr.vmem [resolvable:$true] %s57_s14 }
   0xc   :  { %63 = dma.hbm_to_vmem [thread:$0]  %s56_s12, 1024, %s58_s14, [#allocation7], %s1417_s29, %s1417_s29, %s1418_s30  }
   0xd   :  { %s70_s18 = sshll.u32 %s1423_s17, 4  ;;  %s71_s18 = int_to_ptr.vmem [resolvable:$true] %s70_s18 }
   0xe   :  { %76 = dma.hbm_to_vmem [thread:$0]  %s69_s16, 1024, %s71_s18, [#allocation10], %s1417_s29, %s1417_s29, %s1418_s30  }
   0xf   :  { %1408 = dma.done.wait [#allocation4], 1536  }
  0x10   :  { %1409 = vsyncadd [#allocation4], 4294965760 }
  0x11   :  { %1410 = dma.done.wait [#allocation7], 7168  }
  0x12   :  { %1411 = vsyncadd [#allocation7], 4294960128 }
  0x13   :  { %1412 = dma.done.wait [#allocation10], 1024  }
  0x14   :  { %1413 = vsyncadd [#allocation10], 4294966272  ;;  %v1218_v0 = vld [vmem:[#allocation6 + $0x38] sm:$0xff]  ;;  %v1217_v4 = vld [vmem:[#allocation6 + $0x30] sm:$0xff]  ;;  %s1424_s20 = smov [#allocation11]   ;;  %s880_s24 = sshll.u32 %s1489_s6, 4  ;;  %s881_s24 = int_to_ptr.hbm [resolvable:$true] %s880_s24 }
  0x15   :  { %v1226_v1 = vld [vmem:[#allocation6 + $0x78] sm:$0xff]  ;;  %575 = vmatpush.bf16.msra.mxu0 %v1218_v0  ;;  %v1225_v5 = vld [vmem:[#allocation6 + $0x70] sm:$0xff]  ;;  %v1216_v8 = vld [vmem:[#allocation6 + $0x28] sm:$0xff]  ;;  %s878_s21 = sshll.u32 %s1424_s20, 4  ;;  %s1425_s25 = smov 128   ;;  %s879_s21 = int_to_ptr.vmem [resolvable:$true] %s878_s21 }
  0x16   :  { %v1234_v2 = vld [vmem:[#allocation6 + $0xb8] sm:$0xff]  ;;  %594 = vmatpush.bf16.msra.mxu1 %v1226_v1  ;;  %v1233_v6 = vld [vmem:[#allocation6 + $0xb0] sm:$0xff]  ;;  %v1224_v9 = vld [vmem:[#allocation6 + $0x68] sm:$0xff]  ;;  %s1426_s26 = smov 8  }
  0x17   :  { %v1242_v3 = vld [vmem:[#allocation6 + $0xf8] sm:$0xff]  ;;  %613 = vmatpush.bf16.msra.mxu2 %v1234_v2  ;;  %v1241_v7 = vld [vmem:[#allocation6 + $0xf0] sm:$0xff]  ;;  %v1232_v10 = vld [vmem:[#allocation6 + $0xa8] sm:$0xff] }
  0x18   :  { %632 = vmatpush.bf16.msra.mxu3 %v1242_v3  ;;  %v1240_v11 = vld [vmem:[#allocation6 + $0xe8] sm:$0xff]  ;;  %v1215_v12 = vld [vmem:[#allocation6 + $0x20] sm:$0xff]  ;;  %v1214_v16 = vld [vmem:[#allocation6 + $0x18] sm:$0xff] }
  0x19   :  { %576 = vmatpush.bf16.msra.mxu0 %v1217_v4  ;;  %v1223_v13 = vld [vmem:[#allocation6 + $0x60] sm:$0xff]  ;;  %v1222_v17 = vld [vmem:[#allocation6 + $0x58] sm:$0xff]  ;;  %v1213_v20 = vld [vmem:[#allocation6 + $0x10] sm:$0xff] }
  0x1a   :  { %595 = vmatpush.bf16.msra.mxu1 %v1225_v5  ;;  %v1231_v14 = vld [vmem:[#allocation6 + $0xa0] sm:$0xff]  ;;  %v1230_v18 = vld [vmem:[#allocation6 + $0x98] sm:$0xff]  ;;  %v1221_v21 = vld [vmem:[#allocation6 + $0x50] sm:$0xff] }
  0x1b   :  { %614 = vmatpush.bf16.msra.mxu2 %v1233_v6  ;;  %v1239_v15 = vld [vmem:[#allocation6 + $0xe0] sm:$0xff]  ;;  %v1238_v19 = vld [vmem:[#allocation6 + $0xd8] sm:$0xff]  ;;  %v1229_v22 = vld [vmem:[#allocation6 + $0x90] sm:$0xff] }
  0x1c   :  { %633 = vmatpush.bf16.msra.mxu3 %v1241_v7  ;;  %v1237_v23 = vld [vmem:[#allocation6 + $0xd0] sm:$0xff]  ;;  %v1212_v24 = vld [vmem:[#allocation6 + $0x8] sm:$0xff]  ;;  %v1211_v28 = vld [vmem:[#allocation6] sm:$0xff] }
  0x1d   :  { %577 = vmatpush.bf16.msra.mxu0 %v1216_v8  ;;  %v1220_v25 = vld [vmem:[#allocation6 + $0x48] sm:$0xff]  ;;  %v1219_v29 = vld [vmem:[#allocation6 + $0x40] sm:$0xff]  ;;  %v1202_v33 = vld [vmem:[#allocation3 + $0x14] sm:$0xf0] }
  0x1e   :  { %596 = vmatpush.bf16.msra.mxu1 %v1224_v9  ;;  %v1228_v26 = vld [vmem:[#allocation6 + $0x88] sm:$0xff]  ;;  %v1227_v30 = vld [vmem:[#allocation6 + $0x80] sm:$0xff]  ;;  %v899_v35 = vld [vmem:[#allocation3 + $0x18] sm:$0xf0] }
  0x1f   :  { %615 = vmatpush.bf16.msra.mxu2 %v1232_v10  ;;  %v1236_v27 = vld [vmem:[#allocation6 + $0xc8] sm:$0xff]  ;;  %v1235_v31 = vld [vmem:[#allocation6 + $0xc0] sm:$0xff]  ;;  %v1250_v40 = vld [vmem:[#allocation6 + $0x138] sm:$0xff] }
  0x20   :  { %634 = vmatpush.bf16.msra.mxu3 %v1240_v11  ;;  %v897_v32 = vld [vmem:[#allocation3] sm:$0xf]  ;;  %v1199_v34 = vld [vmem:[#allocation3 + $0x4] sm:$0xf]  ;;  %v905_v36 = vld [vmem:[#allocation3 + $0x8] sm:$0xf] }
  0x21   :  { %578 = vmatpush.bf16.msra.mxu0 %v1215_v12  ;;  %v1203_v37 = vld [vmem:[#allocation3 + $0x1c] sm:$0xf0]  ;;  %v1200_v38 = vld [vmem:[#allocation3 + $0xc] sm:$0xf]  ;;  %v907_v39 = vld [vmem:[#allocation3 + $0x20] sm:$0xf0]  ;;  %v898_v42 = vor.u32 %v1202_v33, %v897_v32  ;;  %v902_v43 = vor.u32 %v1199_v34, %v899_v35 }
  0x22   :  { %597 = vmatpush.bf16.msra.mxu1 %v1223_v13  ;;  %v1258_v41 = vld [vmem:[#allocation6 + $0x178] sm:$0xff]  ;;  %v906_v44 = vor.u32 %v1203_v37, %v905_v36  ;;  %v910_v45 = vor.u32 %v1200_v38, %v907_v39  ;;  %v1249_v46 = vld [vmem:[#allocation6 + $0x130] sm:$0xff]  ;;  %v1248_v48 = vld [vmem:[#allocation6 + $0x128] sm:$0xff] }
  0x23   :  { %616 = vmatpush.bf16.msra.mxu2 %v1231_v14  ;;  %v1257_v47 = vld [vmem:[#allocation6 + $0x170] sm:$0xff]  ;;  %v1256_v49 = vld [vmem:[#allocation6 + $0x168] sm:$0xff]  ;;  %v1247_v50 = vld [vmem:[#allocation6 + $0x120] sm:$0xff] }
  0x24   :  { %635 = vmatpush.bf16.msra.mxu3 %v1239_v15  ;;  %v1255_v51 = vld [vmem:[#allocation6 + $0x160] sm:$0xff]  ;;  %v921_v52 = vld [vmem:[#allocation3 + $0x30] sm:$0xf]  ;;  %v1208_v53 = vld [vmem:[#allocation3 + $0x44] sm:$0xf0] }
  0x25   :  { %579 = vmatpush.bf16.msra.mxu0 %v1214_v16  ;;  %v1205_v54 = vld [vmem:[#allocation3 + $0x34] sm:$0xf]  ;;  %v923_v55 = vld [vmem:[#allocation3 + $0x48] sm:$0xf0]  ;;  %v929_v56 = vld [vmem:[#allocation3 + $0x38] sm:$0xf]  ;;  %v922_v62 = vor.u32 %v1208_v53, %v921_v52 }
  0x26   :  { %598 = vmatpush.bf16.msra.mxu1 %v1222_v17  ;;  %v1209_v57 = vld [vmem:[#allocation3 + $0x4c] sm:$0xf0]  ;;  %v1206_v58 = vld [vmem:[#allocation3 + $0x3c] sm:$0xf]  ;;  %v931_v59 = vld [vmem:[#allocation3 + $0x50] sm:$0xf0]  ;;  %v926_v63 = vor.u32 %v1205_v54, %v923_v55 }
  0x27   :  { %617 = vmatpush.bf16.msra.mxu2 %v1230_v18  ;;  %v1246_v60 = vld [vmem:[#allocation6 + $0x118] sm:$0xff]  ;;  %v930_v0 = vor.u32 %v1209_v57, %v929_v56  ;;  %v934_v1 = vor.u32 %v1206_v58, %v931_v59  ;;  %v1245_v2 = vld [vmem:[#allocation6 + $0x110] sm:$0xff]  ;;  %v1244_v4 = vld [vmem:[#allocation6 + $0x108] sm:$0xff] }
  0x28   :  { %636 = vmatpush.bf16.msra.mxu3 %v1238_v19  ;;  %v1254_v61 = vld [vmem:[#allocation6 + $0x158] sm:$0xff]  ;;  %v1253_v3 = vld [vmem:[#allocation6 + $0x150] sm:$0xff]  ;;  %v1252_v5 = vld [vmem:[#allocation6 + $0x148] sm:$0xff] }
  0x29   :  { %580 = vmatpush.bf16.msra.mxu0 %v1213_v20  ;;  %v1243_v6 = vld [vmem:[#allocation6 + $0x100] sm:$0xff]  ;;  %v913_v8 = vld [vmem:[#allocation3 + $0x10] sm:$0xf]  ;;  %v1204_v9 = vld [vmem:[#allocation3 + $0x24] sm:$0xf0] }
  0x2a   :  { %599 = vmatpush.bf16.msra.mxu1 %v1221_v21  ;;  %v1251_v7 = vld [vmem:[#allocation6 + $0x140] sm:$0xff]  ;;  %v1201_v10 = vld [vmem:[#allocation3 + $0x14] sm:$0xf]  ;;  %v915_v11 = vld [vmem:[#allocation3 + $0x28] sm:$0xf0]  ;;  %v914_v12 = vor.u32 %v1204_v9, %v913_v8 }
  0x2b   :  { %618 = vmatpush.bf16.msra.mxu2 %v1229_v22  ;;  %v918_v13 = vor.u32 %v1201_v10, %v915_v11  ;;  %v937_v14 = vld [vmem:[#allocation3 + $0x40] sm:$0xf]  ;;  %v1210_v15 = vld [vmem:[#allocation3 + $0x54] sm:$0xf0]  ;;  %v1207_v16 = vld [vmem:[#allocation3 + $0x44] sm:$0xf] }
  0x2c   :  { %637 = vmatpush.bf16.msra.mxu3 %v1237_v23  ;;  %v939_v17 = vld [vmem:[#allocation3 + $0x58] sm:$0xf0]  ;;  %v938_v18 = vor.u32 %v1210_v15, %v937_v14  ;;  %v1265_v21 = vld [vmem:[#allocation8 + $0x30] sm:$0xff]  ;;  %v1264_v22 = vld [vmem:[#allocation8 + $0x28] sm:$0xff] }
  0x2d   :  { %581 = vmatpush.bf16.msra.mxu0 %v1212_v24  ;;  %v942_v19 = vor.u32 %v1207_v16, %v939_v17  ;;  %v1266_v20 = vld [vmem:[#allocation8 + $0x38] sm:$0xff]  ;;  %v1263_v23 = vld [vmem:[#allocation8 + $0x20] sm:$0xff]  ;;  %v1272_v32 = vld [vmem:[#allocation9 + $0x28] sm:$0xff] }
  0x2e   :  { %600 = vmatpush.bf16.msra.mxu1 %v1220_v25  ;;  %v1260_v33 = vld [vmem:[#allocation8 + $0x8] sm:$0xff]  ;;  %v1271_v34 = vld [vmem:[#allocation9 + $0x20] sm:$0xff]  ;;  %v1270_v39 = vld [vmem:[#allocation9 + $0x18] sm:$0xff] }
  0x2f   :  { %619 = vmatpush.bf16.msra.mxu2 %v1228_v26  ;;  %v1274_v26 = vld [vmem:[#allocation9 + $0x38] sm:$0xff]  ;;  %v1259_v35 = vld [vmem:[#allocation8] sm:$0xff] }
  0x30   :  { %638 = vmatpush.bf16.msra.mxu3 %v1236_v27  ;;  %v1262_v27 = vld [vmem:[#allocation8 + $0x18] sm:$0xff] }
  0x31   :  { %582 = vmatpush.bf16.msra.mxu0 %v1211_v28  ;;  %v1273_v28 = vld [vmem:[#allocation9 + $0x30] sm:$0xff] }
  0x32   :  { %601 = vmatpush.bf16.msra.mxu1 %v1219_v29  ;;  %v1261_v29 = vld [vmem:[#allocation8 + $0x10] sm:$0xff] }
  0x33   :  { %620 = vmatpush.bf16.msra.mxu2 %v1227_v30 }
  0x34   :  { %639 = vmatpush.bf16.msra.mxu3 %v1235_v31  ;;  %583 = vmatmul.bf16.vlgmr.msra.gmra.mxu0 %v898_v42 }
  0x35   :  { %651 = vmatpush.bf16.msrb.mxu0 %v1250_v40  ;;  %602 = vmatmul.bf16.vlgmr.msra.gmra.mxu1 %v902_v43 }
  0x36   :  { %670 = vmatpush.bf16.msrb.mxu1 %v1258_v41  ;;  %621 = vmatmul.bf16.vlgmr.msra.gmra.mxu2 %v906_v44  ;;  %v1269_v41 = vld [vmem:[#allocation9 + $0x10] sm:$0xff]  ;;  %v1268_v44 = vld [vmem:[#allocation9 + $0x8] sm:$0xff] }
  0x37   :  { %640 = vmatmul.bf16.vlgmr.msra.gmra.mxu3 %v910_v45  ;;  %788 = vmatpush.bf16.msrb.mxu2 %v1274_v26 }
  0x38   :  { %850 = vmatpush.bf16.msrb.mxu3 %v1266_v20 }
  0x39   :  { %652 = vmatpush.bf16.msrb.mxu0 %v1249_v46 }
  0x3a   :  { %671 = vmatpush.bf16.msrb.mxu1 %v1257_v47  ;;  %v1267_v47 = vld [vmem:[#allocation9] sm:$0xff] }
  0x3b   :  { %789 = vmatpush.bf16.msrb.mxu2 %v1273_v28 }
  0x3c   :  { %851 = vmatpush.bf16.msrb.mxu3 %v1265_v21 }
  0x3d   :  { %653 = vmatpush.bf16.msrb.mxu0 %v1248_v48 }
  0x3e   :  { %672 = vmatpush.bf16.msrb.mxu1 %v1256_v49 }
  0x3f   :  { %790 = vmatpush.bf16.msrb.mxu2 %v1272_v32 }
  0x40   :  { %852 = vmatpush.bf16.msrb.mxu3 %v1264_v22 }
  0x41   :  { %654 = vmatpush.bf16.msrb.mxu0 %v1247_v50 }
  0x42   :  { %673 = vmatpush.bf16.msrb.mxu1 %v1255_v51 }
  0x43   :  { %791 = vmatpush.bf16.msrb.mxu2 %v1271_v34 }
  0x44   :  { %588 = vmatmul.bf16.gmra.mxu0 %v922_v62  ;;  %853 = vmatpush.bf16.msrb.mxu3 %v1263_v23 }
  0x45   :  { %655 = vmatpush.bf16.msrb.mxu0 %v1246_v60  ;;  %607 = vmatmul.bf16.gmra.mxu1 %v926_v63  ;;  %v1286_v60 = vld [vmem:[%s1485_s2] ss:$0 sm:$0xff] }
  0x46   :  { %674 = vmatpush.bf16.msrb.mxu1 %v1254_v61  ;;  %626 = vmatmul.bf16.gmra.mxu2 %v930_v0 }
  0x47   :  { %645 = vmatmul.bf16.gmra.mxu3 %v934_v1  ;;  %792 = vmatpush.bf16.msrb.mxu2 %v1270_v39 }
  0x48   :  { %854 = vmatpush.bf16.msrb.mxu3 %v1262_v27 }
  0x49   :  { %656 = vmatpush.bf16.msrb.mxu0 %v1245_v2 }
  0x4a   :  { %675 = vmatpush.bf16.msrb.mxu1 %v1253_v3 }
  0x4b   :  { %793 = vmatpush.bf16.msrb.mxu2 %v1269_v41 }
  0x4c   :  { %855 = vmatpush.bf16.msrb.mxu3 %v1261_v29 }
  0x4d   :  { %657 = vmatpush.bf16.msrb.mxu0 %v1244_v4 }
  0x4e   :  { %676 = vmatpush.bf16.msrb.mxu1 %v1252_v5 }
  0x4f   :  { %794 = vmatpush.bf16.msrb.mxu2 %v1268_v44 }
  0x50   :  { %856 = vmatpush.bf16.msrb.mxu3 %v1260_v33 }
  0x51   :  { %658 = vmatpush.bf16.msrb.mxu0 %v1243_v6 }
  0x52   :  { %677 = vmatpush.bf16.msrb.mxu1 %v1251_v7 }
  0x53   :  { %795 = vmatpush.bf16.msrb.mxu2 %v1267_v47 }
  0x54   :  { %659 = vmatmul.bf16.vlgmr.msrb.gmra.mxu0 %v914_v12  ;;  %857 = vmatpush.bf16.msrb.mxu3 %v1259_v35 }
  0x55   :  { %678 = vmatmul.bf16.vlgmr.msrb.gmra.mxu1 %v918_v13 }
  0x64   :  { %664 = vmatmul.bf16.gmra.mxu0 %v938_v18 }
  0x65   :  { %683 = vmatmul.bf16.gmra.mxu1 %v942_v19 }
  0xb1   :  { %v584_v24 = vpop.f32.mrf.mxu0 }
  0xb2   :  { %v603_v25 = vpop.f32.mrf.mxu1 }
  0xb3   :  { %v604_v46 = vadd.f32 %v603_v25, %v584_v24  ;;  %v1287_v24 = vld [vmem:[%s1488_s5] ss:$0 sm:$0xff] }
  0xb9   :  { %v586_v30 = vpop.f32.mrf.mxu0  ;;  %v622_v38 = vpop.f32.mrf.mxu2 }
  0xba   :  { %v605_v31 = vpop.f32.mrf.mxu1  ;;  %v641_v40 = vpop.f32.mrf.mxu3  ;;  %v623_v48 = vadd.f32 %v622_v38, %v604_v46 }
  0xbb   :  { %v606_v52 = vadd.f32 %v605_v31, %v586_v30 }
  0xbc   :  { %v642_v53 = vadd.f32 %v641_v40, %v623_v48 }
  0xc1   :  { %v589_v36 = vpop.f32.mrf.mxu0  ;;  %v624_v45 = vpop.f32.mrf.mxu2 }
  0xc2   :  { %v608_v37 = vpop.f32.mrf.mxu1  ;;  %v643_v49 = vpop.f32.mrf.mxu3  ;;  %v625_v54 = vadd.f32 %v624_v45, %v606_v52 }
  0xc3   :  { %v609_v1 = vadd.f32 %v608_v37, %v589_v36 }
  0xc4   :  { %v644_v57 = vadd.f32 %v643_v49, %v625_v54 }
  0xc9   :  { %v591_v42 = vpop.f32.mrf.mxu0  ;;  %v627_v55 = vpop.f32.mrf.mxu2 }
  0xca   :  { %v610_v43 = vpop.f32.mrf.mxu1  ;;  %v646_v63 = vpop.f32.mrf.mxu3  ;;  %v628_v4 = vadd.f32 %v627_v55, %v609_v1 }
  0xcb   :  { %v611_v9 = vadd.f32 %v610_v43, %v591_v42 }
  0xcc   :  { %v647_v10 = vadd.f32 %v646_v63, %v628_v4 }
  0xd1   :  { %v660_v50 = vpop.f32.mrf.mxu0  ;;  %v629_v5 = vpop.f32.mrf.mxu2 }
  0xd2   :  { %v679_v51 = vpop.f32.mrf.mxu1  ;;  %v661_v56 = vadd.f32 %v660_v50, %v642_v53  ;;  %v630_v11 = vadd.f32 %v629_v5, %v611_v9  ;;  %v648_v12 = vpop.f32.mrf.mxu3 }
  0xd4   :  { %v680_v61 = vadd.f32 %v679_v51, %v661_v56  ;;  %v649_v14 = vadd.f32 %v648_v12, %v630_v11 }
  0xd6   :  { %v689_v2 = vadd.f32 %v1286_v60, %v680_v61 }
  0xd9   :  { %v662_v58 = vpop.f32.mrf.mxu0 }
  0xda   :  { %v681_v59 = vpop.f32.mrf.mxu1  ;;  %v663_v62 = vadd.f32 %v662_v58, %v644_v57 }
  0xdc   :  { %v682_v0 = vadd.f32 %v681_v59, %v663_v62 }
  0xde   :  { %v690_v3 = vadd.f32 %v1286_v60, %v682_v0 }
  0xe0   :  { %v704_v6 = vpack.c.bf16 %v690_v3, %v689_v2 }
  0xe1   :  { %v665_v7 = vpop.f32.mrf.mxu0 }
  0xe2   :  { %v684_v8 = vpop.f32.mrf.mxu1  ;;  %858 = vmatmul.bf16.vlgmr.msrb.gmra.mxu3 %v704_v6  ;;  %v666_v13 = vadd.f32 %v665_v7, %v647_v10 }
  0xe4   :  { %v685_v16 = vadd.f32 %v684_v8, %v666_v13 }
  0xe6   :  { %v691_v20 = vadd.f32 %v1286_v60, %v685_v16 }
  0xe9   :  { %v667_v15 = vpop.f32.mrf.mxu0 }
  0xea   :  { %v668_v17 = vadd.f32 %v667_v15, %v649_v14  ;;  %v686_v18 = vpop.f32.mrf.mxu1 }
  0xec   :  { %v687_v19 = vadd.f32 %v686_v18, %v668_v17 }
  0xee   :  { %v692_v21 = vadd.f32 %v1286_v60, %v687_v19 }
  0xf0   :  { %v705_v22 = vpack.c.bf16 %v692_v21, %v691_v20 }
  0xf2   :  { %796 = vmatmul.bf16.vlgmr.msrb.gmra.mxu2 %v705_v22 }
 0x165   :  { %v859_v23 = vpop.f32.mrf.mxu3 }
 0x16d   :  { %v861_v28 = vpop.f32.mrf.mxu3 }
 0x175   :  { %v797_v25 = vpop.f32.mrf.mxu2 }
 0x176   :  { %v860_v26 = vadd.f32 %v859_v23, %v797_v25 }
 0x178   :  { %v870_v27 = vadd.f32 %v1287_v24, %v860_v26 }
 0x17a   :  { %872 = vst [vmem:[#allocation11] sm:$0xff] %v870_v27 }
 0x17d   :  { %v799_v29 = vpop.f32.mrf.mxu2 }
 0x17e   :  { %v862_v30 = vadd.f32 %v861_v28, %v799_v29 }
 0x180   :  { %v871_v31 = vadd.f32 %v1287_v24, %v862_v30 }
 0x182   :  { %873 = vst [vmem:[#allocation11 + $0x8] sm:$0xff] %v871_v31 }
 0x183   :  { %886 = dma.vmem_to_hbm [thread:$0]  %s879_s21, 256, %s881_s24, [#allocation5], %s1425_s25, %s1425_s25, %s1426_s26  }
 0x184   :  { %1414 = dma.done.wait [#allocation5], 256  }
 0x185   :  { %1415 = vsyncadd [#allocation5], 4294967040 }
 0x186   :  { %891 = vsyncpa [#allocation4], 1 }
 0x187   :  { %892 = vsyncpa [#allocation7], 1 }
 0x188   :  { %893 = vsyncpa [#allocation10], 1 }
 0x189   :  { %894 = vsyncpa [#allocation5], 1 }

</bundles_post_ra>
